<compile_context>
chip_gen: v6e
topology: v6e:2x2x1
jax: 0.10.0
libtpu: 0.0.40
codegen_flags: <defaults>
</compile_context>

<pallas_src>
import functools

import jax
import jax.numpy as jnp
from jax.experimental import pallas as pl
from jax.experimental.pallas import tpu as pltpu

ALPHA = 0.25
GAMMA = 2.0
LANES = 128
MAX_TILE_ROWS = 1024   # 1024x128 f32 = 512 KiB per input tile (~86% of HBM roofline)


def _focal_loss_kernel(logits_ref, label_ref, out_ref, *, alpha, gamma,
                       n_elem, tile_rows):
    c = pl.program_id(0)            # parallel chunk axis (megacore on v7x)
    t = pl.program_id(1)            # reduction axis within the chunk

    @pl.when(t == 0)
    def _():
        out_ref[...] = jnp.zeros_like(out_ref)

    x = logits_ref[...].astype(jnp.float32)     # logits.float()
    y = label_ref[...].astype(jnp.float32)      # label

    is_pos = (y == 1.0)
    a = jnp.where(is_pos, alpha, 1.0 - alpha)   # alpha weighting

    # Single shared transcendental: e = exp(-|x|) drives both sigmoid and BCE.
    e = jnp.exp(-jnp.abs(x))
    inv = pl.reciprocal(1.0 + e)                # exact; approx=True if tol allows
    probs = jnp.where(x >= 0.0, inv, e * inv)   # sigmoid(x)
    pt = jnp.where(is_pos, probs, 1.0 - probs)

    # BCEWithLogitsLoss(reduction='none'), numerically stable:
    #   max(x, 0) - x*y + log(1 + exp(-|x|))
    ce = jnp.maximum(x, 0.0) - x * y + jnp.log1p(e)

    one_minus_pt = 1.0 - pt
    if gamma == 2.0:                            # compile-time constant: square, no pow
        focal = one_minus_pt * one_minus_pt
    else:
        focal = jnp.power(one_minus_pt, gamma)

    loss = a * focal * ce

    # Mask padding / out-of-bounds rows using the *logical* element index.
    tile_idx = c * pl.num_programs(1) + t
    row0 = tile_idx * tile_rows
    row_ids = jax.lax.broadcasted_iota(jnp.int32, loss.shape, 0)
    lane_ids = jax.lax.broadcasted_iota(jnp.int32, loss.shape, 1)
    elem_idx = (row0 + row_ids) * LANES + lane_ids
    loss = jnp.where(elem_idx < n_elem, loss, 0.0)

    # Fold the tile down to an (8, 128) vreg-shaped partial sum (pure VPU adds).
    if tile_rows % 8 == 0:
        folded = loss.reshape(tile_rows // 8, 8, LANES).sum(axis=0)
    else:
        # Tiny-input path (rows < 8): place the few rows into an 8-sublane frame.
        folded = jnp.zeros((8, LANES), jnp.float32).at[:tile_rows, :].set(loss)

    out_ref[...] += folded


def focal_loss_v1(logits, label, alpha=ALPHA, gamma=GAMMA):
    """Mean focal loss over all elements (matches FocalLossV1(reduction='mean'))."""
    n_elem = logits.size
    flat_x = jnp.ravel(logits)          # native dtype; reshape is free
    flat_y = jnp.ravel(label)

    # Pad only the sub-128 tail (<= 127 elements) so we can view as (rows, 128);
    # padded elements are masked in-kernel via the element-index compare.
    rem = n_elem % LANES
    if rem:
        pad = LANES - rem
        flat_x = jnp.pad(flat_x, (0, pad))
        flat_y = jnp.pad(flat_y, (0, pad))
    rows = flat_x.size // LANES
    x2 = flat_x.reshape(rows, LANES)
    y2 = flat_y.reshape(rows, LANES)

    # Tile rows: as large as possible (<= MAX_TILE_ROWS), multiple of 8,
    # never exceeding the array (full-dim block for tiny inputs).
    if rows < 8:
        tile_rows = rows
    else:
        tile_rows = min(MAX_TILE_ROWS, (rows // 8) * 8)

    n_tiles = pl.cdiv(rows, tile_rows)
    n_chunks = 2 if n_tiles >= 2 else 1          # both TCs on v7x; serial elsewhere
    tiles_per_chunk = pl.cdiv(n_tiles, n_chunks)

    def in_map(c, t):
        # Clamp so a possible extra trailing tile never indexes past the array;
        # the kernel's logical-index mask zeroes its contribution anyway.
        return (jnp.minimum(c * tiles_per_chunk + t, n_tiles - 1), 0)

    kernel = functools.partial(
        _focal_loss_kernel,
        alpha=float(alpha),
        gamma=float(gamma),
        n_elem=int(n_elem),
        tile_rows=int(tile_rows),
    )

    tile_spec = pl.BlockSpec((tile_rows, LANES), in_map)
    partials = pl.pallas_call(
        kernel,
        out_shape=jax.ShapeDtypeStruct((n_chunks, 8, LANES), jnp.float32),
        grid_spec=pltpu.PrefetchScalarGridSpec(
            num_scalar_prefetch=0,
            grid=(n_chunks, tiles_per_chunk),
            in_specs=[tile_spec, tile_spec],
            out_specs=pl.BlockSpec((None, 8, LANES), lambda c, t: (c, 0, 0)),
        ),
        compiler_params=pltpu.CompilerParams(
            dimension_semantics=("parallel", "arbitrary")),
    )(x2, y2)

    # Final lane/sublane/chunk reduction + 'mean' scaling (tiny, done in XLA).
    return jnp.sum(partials) / n_elem


def _focal_loss_ref(logits, label, alpha=ALPHA, gamma=GAMMA):
    x = logits.astype(jnp.float32)
    y = label.astype(jnp.float32)
    a = jnp.where(y == 1.0, alpha, 1.0 - alpha)
    probs = jax.nn.sigmoid(x)
    pt = jnp.where(y == 1.0, probs, 1.0 - probs)
    ce = jnp.maximum(x, 0.0) - x * y + jnp.log1p(jnp.exp(-jnp.abs(x)))
    return jnp.mean(a * (1.0 - pt) ** 2 * ce)


if __name__ == "__main__":
    key = jax.random.PRNGKey(0)
    k1, k2 = jax.random.split(key)
    # Small NCHW-shaped example consistent with a dense prediction head.
    x = jax.random.normal(k1, (2, 4, 16, 16), dtype=jnp.float32)
    label = jax.random.bernoulli(k2, 0.3, (2, 4, 16, 16)).astype(jnp.float32)

    loss = focal_loss_v1(x, label)
    jax.block_until_ready(loss)

    ref = _focal_loss_ref(x, label)
    assert jnp.allclose(loss, ref, rtol=2e-5, atol=1e-6), (loss, ref)
    print("KERNEL_OK")
</pallas_src>

<mosaic_0001>
module attributes {stable_mosaic.version = 11 : i64} {
  func.func @_focal_loss_kernel(%arg0: i32, %arg1: i32, %arg2: memref<16x128xf32, #tpu.memory_space<vmem>>, %arg3: memref<16x128xf32, #tpu.memory_space<vmem>>, %arg4: memref<1x8x128xf32, #tpu.memory_space<vmem>>) attributes {dimension_semantics = [#tpu.dimension_semantics<parallel>, #tpu.dimension_semantics<arbitrary>], iteration_bounds = array<i64: 1, 1>, scalar_prefetch = 0 : i64, scratch_operands = 0 : i64, tpu.core_type = #tpu.core_type<tc>, window_params = [{transform_indices = @transform_0, window_bounds = array<i64: 16, 128>}, {transform_indices = @transform_1, window_bounds = array<i64: 16, 128>}, {transform_indices = @transform_2, window_bounds = array<i64: 1, 8, 128>}]} {
    %c0_i32 = arith.constant 0 : i32
    %0 = arith.cmpi eq, %arg1, %c0_i32 : i32
    %1 = arith.extui %0 : i1 to i32
    %c0_i32_0 = arith.constant 0 : i32
    %2 = arith.cmpi ne, %1, %c0_i32_0 : i32
    scf.if %2 {
      %cst_20 = arith.constant 0.000000e+00 : f32
      %57 = vector.broadcast %cst_20 : f32 to vector<8x128xf32>
      %c0_21 = arith.constant 0 : index
      %c0_22 = arith.constant 0 : index
      %c0_23 = arith.constant 0 : index
      %58 = vector.load %arg4[%c0_21, %c0_22, %c0_23] : memref<1x8x128xf32, #tpu.memory_space<vmem>>, vector<1x8x128xf32>
      %59 = vector.shape_cast %58 : vector<1x8x128xf32> to vector<8x128xf32>
      %60 = vector.shape_cast %57 : vector<8x128xf32> to vector<1x8x128xf32>
      tpu.vector_store %arg4[%c0_21, %c0_22, %c0_23], %60 {strides = array<i32>} : memref<1x8x128xf32, #tpu.memory_space<vmem>>, vector<1x8x128xf32>,
    } else {
    }
    %c0 = arith.constant 0 : index
    %c0_1 = arith.constant 0 : index
    %3 = vector.load %arg2[%c0, %c0_1] : memref<16x128xf32, #tpu.memory_space<vmem>>, vector<16x128xf32>
    %c0_2 = arith.constant 0 : index
    %c0_3 = arith.constant 0 : index
    %4 = vector.load %arg3[%c0_2, %c0_3] : memref<16x128xf32, #tpu.memory_space<vmem>>, vector<16x128xf32>
    %cst = arith.constant 1.000000e+00 : f32
    %5 = vector.broadcast %cst : f32 to vector<16x128xf32>
    %6 = arith.cmpf oeq, %4, %5 : vector<16x128xf32>
    %cst_4 = arith.constant 2.500000e-01 : f32
    %cst_5 = arith.constant 7.500000e-01 : f32
    %7 = vector.broadcast %cst_4 : f32 to vector<16x128xf32>
    %8 = vector.broadcast %cst_5 : f32 to vector<16x128xf32>
    %9 = arith.select %6, %7, %8 : vector<16x128xi1>, vector<16x128xf32>
    %10 = math.absf %3 : vector<16x128xf32>
    %cst_6 = arith.constant 0.000000e+00 : f32
    %11 = vector.broadcast %cst_6 : f32 to vector<16x128xf32>
    %12 = arith.subf %11, %10 : vector<16x128xf32>
    %13 = math.exp %12 : vector<16x128xf32>
    %cst_7 = arith.constant 1.000000e+00 : f32
    %14 = vector.broadcast %cst_7 : f32 to vector<16x128xf32>
    %15 = arith.addf %14, %13 : vector<16x128xf32>
    %16 = tpu.reciprocal %15 : vector<16x128xf32> -> vector<16x128xf32>
    %cst_8 = arith.constant 0.000000e+00 : f32
    %17 = vector.broadcast %cst_8 : f32 to vector<16x128xf32>
    %18 = arith.cmpf oge, %3, %17 : vector<16x128xf32>
    %19 = arith.mulf %13, %16 : vector<16x128xf32>
    %20 = arith.select %18, %16, %19 : vector<16x128xi1>, vector<16x128xf32>
    %cst_9 = arith.constant 1.000000e+00 : f32
    %21 = vector.broadcast %cst_9 : f32 to vector<16x128xf32>
    %22 = arith.subf %21, %20 : vector<16x128xf32>
    %23 = arith.select %6, %20, %22 : vector<16x128xi1>, vector<16x128xf32>
    %cst_10 = arith.constant 0.000000e+00 : f32
    %24 = vector.broadcast %cst_10 : f32 to vector<16x128xf32>
    %25 = arith.maximumf %3, %24 : vector<16x128xf32>
    %26 = arith.mulf %3, %4 : vector<16x128xf32>
    %27 = arith.subf %25, %26 : vector<16x128xf32>
    %28 = math.log1p %13 : vector<16x128xf32>
    %29 = arith.addf %27, %28 : vector<16x128xf32>
    %cst_11 = arith.constant 1.000000e+00 : f32
    %30 = vector.broadcast %cst_11 : f32 to vector<16x128xf32>
    %31 = arith.subf %30, %23 : vector<16x128xf32>
    %32 = arith.mulf %31, %31 : vector<16x128xf32>
    %33 = arith.mulf %9, %32 : vector<16x128xf32>
    %34 = arith.mulf %33, %29 : vector<16x128xf32>
    %c1_i32 = arith.constant 1 : i32
    %35 = arith.muli %arg0, %c1_i32 : i32
    %36 = arith.addi %35, %arg1 : i32
    %c16_i32 = arith.constant 16 : i32
    %37 = arith.muli %36, %c16_i32 : i32
    %38 = tpu.iota {dimensions = array<i32: 0>} : vector<16x128xi32>
    %39 = tpu.iota {dimensions = array<i32: 1>} : vector<16x128xi32>
    %40 = vector.broadcast %37 : i32 to vector<16x128xi32>
    %41 = arith.addi %40, %38 : vector<16x128xi32>
    %c128_i32 = arith.constant 128 : i32
    %42 = vector.broadcast %c128_i32 : i32 to vector<16x128xi32>
    %43 = arith.muli %41, %42 : vector<16x128xi32>
    %44 = arith.addi %43, %39 : vector<16x128xi32>
    %c2048_i32 = arith.constant 2048 : i32
    %45 = vector.broadcast %c2048_i32 : i32 to vector<16x128xi32>
    %46 = arith.cmpi slt, %44, %45 : vector<16x128xi32>
    %cst_12 = arith.constant 0.000000e+00 : f32
    %47 = vector.broadcast %cst_12 : f32 to vector<16x128xf32>
    %48 = arith.select %46, %34, %47 : vector<16x128xi1>, vector<16x128xf32>
    %49 = vector.shape_cast %48 : vector<16x128xf32> to vector<2x8x128xf32>
    %cst_13 = arith.constant dense<0.000000e+00> : vector<8x128xf32>
    %50 = vector.multi_reduction <add>, %49, %cst_13 [0] : vector<2x8x128xf32> to vector<8x128xf32>
    %c0_14 = arith.constant 0 : index
    %c0_15 = arith.constant 0 : index
    %c0_16 = arith.constant 0 : index
    %51 = vector.load %arg4[%c0_14, %c0_15, %c0_16] : memref<1x8x128xf32, #tpu.memory_space<vmem>>, vector<1x8x128xf32>
    %52 = vector.shape_cast %51 : vector<1x8x128xf32> to vector<8x128xf32>
    %53 = arith.addf %52, %50 : vector<8x128xf32>
    %c0_17 = arith.constant 0 : index
    %c0_18 = arith.constant 0 : index
    %c0_19 = arith.constant 0 : index
    %54 = vector.load %arg4[%c0_17, %c0_18, %c0_19] : memref<1x8x128xf32, #tpu.memory_space<vmem>>, vector<1x8x128xf32>
    %55 = vector.shape_cast %54 : vector<1x8x128xf32> to vector<8x128xf32>
    %56 = vector.shape_cast %53 : vector<8x128xf32> to vector<1x8x128xf32>
    tpu.vector_store %arg4[%c0_17, %c0_18, %c0_19], %56 {strides = array<i32>} : memref<1x8x128xf32, #tpu.memory_space<vmem>>, vector<1x8x128xf32>,
    return
  }
  func.func @transform_0(%arg0: i32, %arg1: i32) -> (i32, i32) {
    %c1_i32 = arith.constant 1 : i32
    %0 = arith.muli %arg0, %c1_i32 : i32
    %1 = arith.addi %0, %arg1 : i32
    %c0_i32 = arith.constant 0 : i32
    %2 = arith.minsi %1, %c0_i32 : i32
    %c0_i32_0 = arith.constant 0 : i32
    %c0_i32_1 = arith.constant 0 : i32
    return %2, %c0_i32_0 : i32, i32
  }
  func.func @transform_1(%arg0: i32, %arg1: i32) -> (i32, i32) {
    %c1_i32 = arith.constant 1 : i32
    %0 = arith.muli %arg0, %c1_i32 : i32
    %1 = arith.addi %0, %arg1 : i32
    %c0_i32 = arith.constant 0 : i32
    %2 = arith.minsi %1, %c0_i32 : i32
    %c0_i32_0 = arith.constant 0 : i32
    %c0_i32_1 = arith.constant 0 : i32
    return %2, %c0_i32_0 : i32, i32
  }
  func.func @transform_2(%arg0: i32, %arg1: i32) -> (i32, i32, i32) {
    %c0_i32 = arith.constant 0 : i32
    %c0_i32_0 = arith.constant 0 : i32
    %c0_i32_1 = arith.constant 0 : i32
    return %arg0, %c0_i32, %c0_i32_0 : i32, i32, i32
  }
}

</mosaic_0001>

<bundles_post_ra>
// kernel: tpu_custom_call.1
= control target key start
LH: loop header
LB: loop body
LE: loop exit
PB: predicated region body
PF: predicated region fallthrough
CT: control target
= control target key end

     0   :  { %7 = vsyncpa [#allocation3], 0  ;;  %s302_s0 = inlined_call_operand.hbm [shape: f32[16,128], index: 0, kind: input, shape index: {}]   ;;  %s303_s1 = inlined_call_operand.hbm [shape: f32[16,128], index: 1, kind: input, shape index: {}]   ;;  %s304_s2 = inlined_call_operand.hbm [shape: f32[1,8,128], index: 2, kind: output, shape index: {}]  }
   0x1   :  { %8 = vsyncpa [#allocation6], 0 }
   0x2   :  { %9 = vsyncpa [#allocation4], 0  ;;  %s256_s9 = smov [#allocation2]  }
   0x3   :  { %s21_s10 = sshll.u32 %s256_s9, 4  ;;  %s22_s10 = int_to_ptr.vmem [resolvable:$true] %s21_s10 }
   0x4   :  { %s198_s11 = scalar_lea.vmem %s22_s10, 256  ;;  %p203_p1 = scmp.lt.s32.totalorder %s22_s10, %s22_s10 }
   0x5   :  { %p199_p0 = scmp.ne.s32.totalorder %s22_s10, %s198_s11  ;;  %p204_p2 = scmp.lt.s32.totalorder %s198_s11, %s198_s11 }
   0x7   :  { %p205_p3 = por %p204_p2, %p203_p1 }
   0x9   :  { %p206_p4 = pnand %p205_p3, %p199_p0 }
   0xb   :  { %209 = shalt.err (!%p206_p4)
}
   0xc   :  { %s257_s12 = smov 128   ;;  %s258_s13 = smov 8  }
   0xd   :  { %27 = dma.hbm_to_vmem [thread:$0]  %s302_s0, 256, %s22_s10, [#allocation3], %s257_s12, %s257_s12, %s258_s13  }
   0xe   :  { %s259_s16 = smov [#allocation5]  }
   0xf   :  { %s39_s17 = sshll.u32 %s259_s16, 4  ;;  %s40_s17 = int_to_ptr.vmem [resolvable:$true] %s39_s17 }
  0x10   :  { %s218_s18 = scalar_lea.vmem %s40_s17, 256  ;;  %p223_p6 = scmp.lt.s32.totalorder %s40_s17, %s40_s17 }
  0x11   :  { %p219_p5 = scmp.ne.s32.totalorder %s40_s17, %s218_s18  ;;  %p224_p7 = scmp.lt.s32.totalorder %s218_s18, %s218_s18 }
  0x13   :  { %p225_p8 = por %p224_p7, %p223_p6 }
  0x15   :  { %p226_p9 = pnand %p225_p8, %p219_p5 }
  0x17   :  { %229 = shalt.err (!%p226_p9)
}
  0x18   :  { %45 = dma.hbm_to_vmem [thread:$0]  %s303_s1, 256, %s40_s17, [#allocation6], %s257_s12, %s257_s12, %s258_s13  }
  0x19   :  { %250 = dma.done.wait [#allocation3], 256  }
  0x1a   :  { %251 = vsyncadd [#allocation3], 4294967040 }
  0x1b   :  { %252 = dma.done.wait [#allocation6], 256  }
  0x1c   :  { %253 = vsyncadd [#allocation6], 4294967040  ;;  %v65_v0 = vld [vmem:[#allocation2] sm:$0xff]  ;;  %v66_v1 = vld [vmem:[#allocation2 + $0x8] sm:$0xff]  ;;  %v131_v12 = vlaneseq  ;;  %v260_v53 = vmov 0.75   ;;  %s261_s0 = smov [#allocation7]  }
  0x1d   :  { %v73_v2 = vand.u32 2147483647, %v65_v0  ;;  %v74_v3 = vand.u32 2147483647, %v66_v1  ;;  %v67_v16 = vld [vmem:[#allocation5] sm:$0xff]  ;;  %v68_v17 = vld [vmem:[#allocation5 + $0x8] sm:$0xff] }
  0x1e   :  { %v132_v15 = vshrl.u32 %v131_v12, 7  ;;  %v135_v19 = vand.u32 127, %v131_v12  ;;  %vm69_vm0 = vcmp.eq.f32.partialorder %v67_v16, 1.0  ;;  %vm85_vm1 = vcmp.ge.f32.partialorder %v65_v0, 0.0  ;;  %s157_s1 = sshll.u32 %s261_s0, 4  ;;  %s158_s1 = int_to_ptr.vmem [resolvable:$true] %s157_s1 }
  0x1f   :  { %v75_v4 = vsub.f32 0.0, %v73_v2  ;;  %v76_v5 = vsub.f32 0.0, %v74_v3  ;;  %v97_v25 = vmul.f32 %v67_v16, %v65_v0  ;;  %vm70_vm2 = vcmp.eq.f32.partialorder %v68_v17, 1.0  ;;  %s230_s21 = scalar_lea.vmem %s158_s1, 128  ;;  %p235_p11 = scmp.lt.s32.totalorder %s158_s1, %s158_s1 }
  0x20   :  { %v133_v22 = vadd.s32 8, %v132_v15  ;;  %v139_v23 = vmul.u32 128, %v132_v15  ;;  %vm86_vm3 = vcmp.ge.f32.partialorder %v66_v1, 0.0  ;;  %v95_v29 = vmax.f32 %v65_v0, 0.0  ;;  %p231_p10 = scmp.ne.s32.totalorder %s158_s1, %s230_s21  ;;  %p236_p12 = scmp.lt.s32.totalorder %s230_s21, %s230_s21 }
  0x21   :  { %v77_v6 = vmul.f32 1.442695, %v75_v4  ;;  %v79_v7 = vmul.f32 1.442695, %v76_v5  ;;  %v96_v32 = vmax.f32 %v66_v1, 0.0  ;;  %v98_v33 = vmul.f32 %v68_v17, %v66_v1 }
  0x22   :  { %v99_v45 = vsub.f32 %v95_v29, %v97_v25  ;;  %v140_v46 = vmul.u32 128, %v133_v22  ;;  %v71_v54 = vsel %vm69_vm0, 0.25, %v260_v53  ;;  %v141_v56 = vadd.s32 %v139_v23, %v135_v19  ;;  %p237_p13 = por %p236_p12, %p235_p11 }
  0x23   :  { %178 = vpow2.f32 %v77_v6  ;;  %v100_v48 = vsub.f32 %v96_v32, %v98_v33  ;;  %v72_v57 = vsel %vm70_vm2, 0.25, %v260_v53 }
  0x24   :  { %180 = vpow2.f32 %v79_v7  ;;  %v142_v60 = vadd.s32 %v140_v46, %v135_v19  ;;  %vm143_vm6 = vcmp.lt.s32.totalorder %v141_v56, 2048  ;;  %p238_p0 = pnand %p237_p13, %p231_p10 }
  0x26   :  { %vm144_vm7 = vcmp.lt.s32.totalorder %v142_v60, 2048 }
  0x30   :  { %v179_v8 = vpop.eup %178 }
  0x31   :  { %v181_v9 = vpop.eup %180  ;;  %v81_v10 = vadd.f32 1.0, %v179_v8  ;;  %v104_v13 = vmul.f32 -0.5, %v179_v8  ;;  %v107_v20 = vand.u32 2147483647, %v179_v8 }
  0x32   :  { %v82_v11 = vadd.f32 1.0, %v181_v9  ;;  %v113_v14 = vmul.f32 -0.5, %v181_v9  ;;  %v116_v26 = vand.u32 2147483647, %v181_v9 }
  0x33   :  { %182 = vrcp.f32 %v81_v10  ;;  %v105_v18 = vadd.f32 1.0, %v104_v13  ;;  %vm283_vm4 = vcmp.lt.f32.partialorder %v107_v20, 0.0004427343 }
  0x34   :  { %184 = vrcp.f32 %v82_v11  ;;  %v114_v21 = vadd.f32 1.0, %v113_v14  ;;  %vm287_vm5 = vcmp.lt.f32.partialorder %v116_v26, 0.0004427343 }
  0x35   :  { %186 = vlog2.f32 %v81_v10  ;;  %v106_v34 = vmul.f32 %v179_v8, %v105_v18 }
  0x36   :  { %188 = vlog2.f32 %v82_v11  ;;  %v115_v39 = vmul.f32 %v181_v9, %v114_v21 }
  0x40   :  { %v183_v24 = vpop.eup %182 }
  0x41   :  { %v185_v27 = vpop.eup %184  ;;  %v87_v28 = vmul.f32 %v183_v24, %v179_v8 }
  0x42   :  { %v187_v30 = vpop.eup %186  ;;  %v88_v31 = vmul.f32 %v185_v27, %v181_v9 }
  0x43   :  { %v189_v35 = vpop.eup %188  ;;  %v89_v36 = vsel %vm85_vm1, %v183_v24, %v87_v28  ;;  %v103_v37 = vmul.f32 0.6931472, %v187_v30 }
  0x44   :  { %v90_v40 = vsel %vm86_vm3, %v185_v27, %v88_v31  ;;  %v91_v41 = vsub.f32 1.0, %v89_v36  ;;  %v112_v42 = vmul.f32 0.6931472, %v189_v35 }
  0x45   :  { %v92_v44 = vsub.f32 1.0, %v90_v40  ;;  %v109_v49 = vsel %vm283_vm4, %v106_v34, %v103_v37 }
  0x46   :  { %v93_v47 = vsel %vm69_vm0, %v89_v36, %v91_v41  ;;  %v118_v51 = vsel %vm287_vm5, %v115_v39, %v112_v42  ;;  %v119_v58 = vadd.f32 %v109_v49, %v99_v45 }
  0x47   :  { %v94_v50 = vsel %vm70_vm2, %v90_v40, %v92_v44  ;;  %v121_v52 = vsub.f32 1.0, %v93_v47  ;;  %v120_v61 = vadd.f32 %v118_v51, %v100_v48 }
  0x48   :  { %v122_v55 = vsub.f32 1.0, %v94_v50 }
  0x49   :  { %v123_v59 = vmul.f32 %v121_v52, %v121_v52 }
  0x4a   :  { %v124_v62 = vmul.f32 %v122_v55, %v122_v55 }
  0x4b   :  { %v125_v63 = vmul.f32 %v123_v59, %v71_v54 }
  0x4c   :  { %v126_v0 = vmul.f32 %v124_v62, %v72_v57 }
  0x4d   :  { %v127_v1 = vmul.f32 %v125_v63, %v119_v58 }
  0x4e   :  { %v128_v2 = vmul.f32 %v126_v0, %v120_v61 }
  0x4f   :  { %v145_v3 = vsel %vm143_vm6, %v127_v1, 0.0 }
  0x50   :  { %v146_v4 = vsel %vm144_vm7, %v128_v2, 0.0 }
  0x51   :  { %v147_v5 = vadd.f32 %v146_v4, %v145_v3 }
  0x53   :  { %150 = vst [vmem:[#allocation7] sm:$0xff] %v147_v5 }
  0x54   :  { %241 = shalt.err (!%p238_p0)
}
  0x55   :  { %160 = dma.vmem_to_hbm [thread:$0]  %s158_s1, 128, %s304_s2, [#allocation4]  }
  0x56   :  { %254 = dma.done.wait [#allocation4], 128  }
  0x57   :  { %255 = vsyncadd [#allocation4], 4294967168 }
  0x58   :  { %164 = vsyncpa [#allocation3], 1 }
  0x59   :  { %165 = vsyncpa [#allocation6], 1 }
  0x5a   :  { %166 = vsyncpa [#allocation4], 1 }

</bundles_post_ra>
